<compile_context>
chip_gen: v7x
topology: tpu7x:2x2x1
jax: 0.10.0
libtpu: 0.0.40
codegen_flags: <defaults>
</compile_context>

<pallas_src>
import jax
import jax.numpy as jnp
from jax.experimental import pallas as pl
from jax.experimental.pallas import tpu as pltpu


def _round_up(v, m):
    return (v + m - 1) // m * m


def _next_pow2(v):
    p = 1
    while p < v:
        p *= 2
    return p


def _pad_to(arr, shape):
    pads = [(0, s - d) for d, s in zip(arr.shape, shape)]
    return jnp.pad(arr, pads)


# ---------------------------------------------------------------------------
# Kernels
# ---------------------------------------------------------------------------
def gcn_pass1_kernel(a_ref, x_ref, dinv_ref, w1_ref, b1_ref, w2_ref,
                     m_ref, acc_ref):
    """Grid (row_tile i, k_tile k):
         acc += (A+I)[i,k] @ Xs[k]                         (int8->bf16, f32 acc)
       last k epilogue:
         Ms[i] = dinv[i] * ( relu( dinv[i]*acc @ W1 + b1 ) @ W2 )
       (Xs = dinv * X pre-scaled in the wrapper; the trailing dinv pre-scales
        M for pass 2 so pass 2 only needs a row post-scale.)"""
    k = pl.program_id(1)

    @pl.when(k == 0)
    def _():
        acc_ref[...] = jnp.zeros_like(acc_ref)

    a = a_ref[...].astype(jnp.bfloat16)          # 0/1(+dup counts) -> exact bf16
    acc_ref[...] += jnp.dot(a, x_ref[...], preferred_element_type=jnp.float32)

    @pl.when(k == pl.num_programs(1) - 1)
    def _():
        dinv = dinv_ref[...]                     # (TM, 1) f32
        ax = acc_ref[...] * dinv                 # completes A_hat @ X (rows)
        h = jnp.dot(ax.astype(jnp.bfloat16), w1_ref[...],
                    preferred_element_type=jnp.float32) + b1_ref[...]
        h = jnp.maximum(h, 0.0)                  # ReLU in f32
        m = jnp.dot(h.astype(jnp.bfloat16), w2_ref[...],
                    preferred_element_type=jnp.float32)
        m_ref[...] = (m * dinv).astype(m_ref.dtype)


def gcn_pass2_kernel(a_ref, m_ref, dinv_ref, b2_ref, z_ref, acc_ref):
    """Grid (i, k):  acc += (A+I)[i,k] @ Ms[k];  last k: Z[i] = dinv[i]*acc + b2."""
    k = pl.program_id(1)

    @pl.when(k == 0)
    def _():
        acc_ref[...] = jnp.zeros_like(acc_ref)

    a = a_ref[...].astype(jnp.bfloat16)
    acc_ref[...] += jnp.dot(a, m_ref[...], preferred_element_type=jnp.float32)

    @pl.when(k == pl.num_programs(1) - 1)
    def _():
        z_ref[...] = (acc_ref[...] * dinv_ref[...] + b2_ref[...]).astype(z_ref.dtype)


# ---------------------------------------------------------------------------
# Per-generation tiling
# ---------------------------------------------------------------------------
def _pick_tiles(n):
    kind = ""
    try:
        kind = jax.devices()[0].device_kind.lower()
    except Exception:
        pass
    if "v5" in kind:                 # v5e: 4x128^2 MXU, most BW-starved, 16MiB default scoped
        tm_cap, tk_cap, vmem = 128, 512, 96 * 1024 * 1024
    elif "v6" in kind:               # v6e: 128 MiB VMEM -> larger row tiles
        tm_cap, tk_cap, vmem = 512, 1024, 96 * 1024 * 1024
    else:                            # v7x (64 MiB VMEM) / unknown: conservative
        tm_cap, tk_cap, vmem = 256, 1024, 48 * 1024 * 1024

    # Row tile: power of two, >=32 (int8 sublane packing), small enough that
    # the "parallel" axis gets >= 2 tiles when the graph is big enough.
    tm = min(tm_cap, max(32, _next_pow2(-(-n // 2))))
    np_ = _round_up(n, tm)
    q = np_ // tm
    # Contraction tile: multiple of tm that divides np_, close to tk_cap.
    k_mult = max(1, min(q, tk_cap // tm))
    while q % k_mult:
        k_mult -= 1
    tk = k_mult * tm
    if tk != np_ and tk % 128:
        tk = np_                     # keep the lane dim 128-aligned or full-extent
    return tm, tk, np_, vmem


# ---------------------------------------------------------------------------
# Wrapper
# ---------------------------------------------------------------------------
def gnn_encoder(x, edge_index, params):
    n, cin = x.shape
    hid = params["w1"].shape[1]
    out = params["w2"].shape[1]

    tm, tk, np_, vmem_limit = _pick_tiles(n)
    ci = _round_up(cin, 128)
    hp = _round_up(hid, 128)
    op = _round_up(out, 128)

    src, dst = edge_index[0], edge_index[1]

    # ---- glue (plain JAX): (A+I) scattered straight into the padded int8
    # buffer (exact); degree / D^-1/2 computed from the edge list, no N^2 f32.
    a = jnp.zeros((np_, np_), jnp.int8)
    a = a.at[dst, src].add(jnp.int8(1))                     # message flow src -> dst
    self_w = jnp.zeros((n,), jnp.float32).at[dst].add(jnp.where(src == dst, 1.0, 0.0))
    need_loop = self_w == 0.0                               # add_remaining_self_loops
    idx_n = jnp.arange(n)
    a = a.at[idx_n, idx_n].add(need_loop.astype(jnp.int8))
    deg = jnp.zeros((n,), jnp.float32).at[dst].add(1.0) + jnp.where(need_loop, 1.0, 0.0)
    dinv = jnp.where(deg > 0, jax.lax.rsqrt(deg), 0.0)      # (n,)

    dinv_p = _pad_to(dinv.reshape(n, 1), (np_, 1)).astype(jnp.float32)
    xs_p = _pad_to(dinv[:, None] * x, (np_, ci)).astype(jnp.bfloat16)   # D^-1/2 X

    w1_p = _pad_to(params["w1"], (ci, hp)).astype(jnp.bfloat16)
    b1_p = _pad_to(params["b1"].reshape(1, hid), (1, hp)).astype(jnp.float32)
    w2_p = _pad_to(params["w2"], (hp, op)).astype(jnp.bfloat16)
    b2_p = _pad_to(params["b2"].reshape(1, out), (1, op)).astype(jnp.float32)

    grid = (np_ // tm, np_ // tk)

    def rows_k(shape):   # A tile, varies with (i, k)
        return pl.BlockSpec(shape, lambda i, k: (i, k))

    def rows(shape):     # row-tiled, constant over k
        return pl.BlockSpec(shape, lambda i, k: (i,) + (0,) * (len(shape) - 1))

    def kdim(shape):     # contraction-tiled operand (Xs / Ms)
        return pl.BlockSpec(shape, lambda i, k: (k,) + (0,) * (len(shape) - 1))

    def const(shape):
        return pl.BlockSpec(shape, lambda i, k: (0,) * len(shape))

    cparams = pltpu.CompilerParams(
        dimension_semantics=("parallel", "arbitrary"),
        vmem_limit_bytes=vmem_limit)

    wbytes = 2 * (ci * hp + hp * op) + 4 * (hp + op)
    cost1 = pl.CostEstimate(
        flops=2 * np_ * np_ * ci + 2 * np_ * (ci * hp + hp * op),
        transcendentals=0,
        bytes_accessed=np_ * np_ + 2 * np_ * ci + 2 * np_ * op + 4 * np_ + wbytes)
    cost2 = pl.CostEstimate(
        flops=2 * np_ * np_ * op,
        transcendentals=0,
        bytes_accessed=np_ * np_ + 2 * np_ * op + 4 * np_ * op + 4 * np_ + 4 * op)

    # Pass 1: Ms = dinv * ( relu( dinv*((A+I) @ Xs) @ W1 + b1 ) @ W2 )
    m = pl.pallas_call(
        gcn_pass1_kernel,
        out_shape=jax.ShapeDtypeStruct((np_, op), jnp.bfloat16),
        grid=grid,
        in_specs=[rows_k((tm, tk)),    # (A+I) int8 tile
                  kdim((tk, ci)),      # Xs  (bf16)
                  rows((tm, 1)),       # dinv row tile (f32)
                  const((ci, hp)),     # W1
                  const((1, hp)),      # b1
                  const((hp, op))],    # W2
        out_specs=rows((tm, op)),
        scratch_shapes=[pltpu.VMEM((tm, ci), jnp.float32)],
        compiler_params=cparams,
        cost_estimate=cost1,
    )(a, xs_p, dinv_p, w1_p, b1_p, w2_p)

    # Pass 2: Z = dinv * ((A+I) @ Ms) + b2
    z = pl.pallas_call(
        gcn_pass2_kernel,
        out_shape=jax.ShapeDtypeStruct((np_, op), jnp.float32),
        grid=grid,
        in_specs=[rows_k((tm, tk)),    # (A+I) int8 tile
                  kdim((tk, op)),      # Ms (already dinv-prescaled)
                  rows((tm, 1)),       # dinv row tile
                  const((1, op))],     # b2
        out_specs=rows((tm, op)),
        scratch_shapes=[pltpu.VMEM((tm, op), jnp.float32)],
        compiler_params=cparams,
        cost_estimate=cost2,
    )(a, m, dinv_p, b2_p)

    return z[:n, :out]


# ---------------------------------------------------------------------------
# Pure-JAX f32 reference (PyG GCNConv semantics) and params
# ---------------------------------------------------------------------------
def _reference(x, edge_index, params):
    n = x.shape[0]
    src, dst = edge_index[0], edge_index[1]
    a = jnp.zeros((n, n), jnp.float32).at[dst, src].add(1.0)
    diag = jnp.diagonal(a)
    a = a + jnp.diag(jnp.where(diag == 0.0, 1.0, 0.0))
    deg = a.sum(axis=1)
    dinv = jnp.where(deg > 0, 1.0 / jnp.sqrt(deg), 0.0)
    a_hat = dinv[:, None] * a * dinv[None, :]
    h = jax.nn.relu(a_hat @ (x @ params["w1"]) + params["b1"])
    return a_hat @ (h @ params["w2"]) + params["b2"]


def init_params(key, in_channels, hidden_channels, out_channels):
    ks = jax.random.split(key, 4)
    scale = 0.1
    return {
        "w1": scale * jax.random.normal(ks[0], (in_channels, hidden_channels), jnp.float32),
        "b1": scale * jax.random.normal(ks[1], (hidden_channels,), jnp.float32),
        "w2": scale * jax.random.normal(ks[2], (hidden_channels, out_channels), jnp.float32),
        "b2": scale * jax.random.normal(ks[3], (out_channels,), jnp.float32),
    }


if __name__ == "__main__":
    key = jax.random.PRNGKey(0)
    k_x, k_e, k_p = jax.random.split(key, 3)

    num_nodes = 32
    in_channels = 16
    hidden_channels = 64
    out_channels = 32
    num_edges = 64

    x = jax.random.normal(k_x, (num_nodes, in_channels), jnp.float32)
    edge_index = jax.random.randint(k_e, (2, num_edges), 0, num_nodes, jnp.int32)
    params = init_params(k_p, in_channels, hidden_channels, out_channels)

    z = jax.jit(gnn_encoder)(x, edge_index, params)
    jax.block_until_ready(z)
    assert z.shape == (num_nodes, out_channels)

    z_ref = _reference(x, edge_index, params)
    err = float(jnp.max(jnp.abs(z - z_ref)))
    assert err < 1e-1, f"max abs err {err}"
    print("KERNEL_OK")
</pallas_src>

<mosaic_0001>
module attributes {stable_mosaic.version = 11 : i64} {
  func.func private @main(%arg0: i32) attributes {dimension_semantics = [#tpu.dimension_semantics<core_parallel>], iteration_bounds = array<i64: 2>, tpu.core_type = #tpu.core_type<sc_scalar_subcore>, window_params = []} {
    return
  }
}

module attributes {stable_mosaic.version = 11 : i64} {
  func.func private @main(%arg0: i32) attributes {dimension_semantics = [#tpu.dimension_semantics<core_parallel>], iteration_bounds = array<i64: 2>, tpu.core_type = #tpu.core_type<sc_scalar_subcore>, window_params = []} {
    return
  }
}

module attributes {stable_mosaic.version = 11 : i64} {
  func.func @gcn_pass2_kernel(%arg0: i32, %arg1: i32, %arg2: memref<32x32xi8, #tpu.memory_space<vmem>>, %arg3: memref<32x128xbf16, #tpu.memory_space<vmem>>, %arg4: memref<32x1xf32, #tpu.memory_space<vmem>>, %arg5: memref<1x128xf32, #tpu.memory_space<vmem>>, %arg6: memref<32x128xf32, #tpu.memory_space<vmem>>, %arg7: memref<32x128xf32, #tpu.memory_space<vmem>>) attributes {dimension_semantics = [#tpu.dimension_semantics<parallel>, #tpu.dimension_semantics<arbitrary>], iteration_bounds = array<i64: 1, 1>, scalar_prefetch = 0 : i64, scratch_operands = 1 : i64, tpu.core_type = #tpu.core_type<tc>, window_params = [{transform_indices = @transform_0, window_bounds = array<i64: 32, 32>}, {transform_indices = @transform_1, window_bounds = array<i64: 32, 128>}, {transform_indices = @transform_2, window_bounds = array<i64: 32, 1>}, {pipeline_mode = #tpu.pipeline_mode<synchronous>, transform_indices = @transform_3, window_bounds = array<i64: 1, 128>}, {transform_indices = @transform_4, window_bounds = array<i64: 32, 128>}]} {
    %c0_i32 = arith.constant 0 : i32
    %0 = arith.cmpi eq, %arg1, %c0_i32 : i32
    %1 = arith.extui %0 : i1 to i32
    %c0_i32_0 = arith.constant 0 : i32
    %2 = arith.cmpi ne, %1, %c0_i32_0 : i32
    scf.if %2 {
      %cst_10 = arith.constant 0.000000e+00 : f32
      %13 = vector.broadcast %cst_10 : f32 to vector<32x128xf32>
      %c0_11 = arith.constant 0 : index
      %c0_12 = arith.constant 0 : index
      %14 = vector.load %arg7[%c0_11, %c0_12] : memref<32x128xf32, #tpu.memory_space<vmem>>, vector<32x128xf32>
      tpu.vector_store %arg7[%c0_11, %c0_12], %13 {strides = array<i32>} : memref<32x128xf32, #tpu.memory_space<vmem>>, vector<32x128xf32>,
    } else {
    }
    %c0 = arith.constant 0 : index
    %c0_1 = arith.constant 0 : index
    %3 = vector.load %arg2[%c0, %c0_1] : memref<32x32xi8, #tpu.memory_space<vmem>>, vector<32x32xi8>
    %4 = arith.sitofp %3 : vector<32x32xi8> to vector<32x32xbf16>
    %c0_2 = arith.constant 0 : index
    %c0_3 = arith.constant 0 : index
    %5 = vector.load %arg7[%c0_2, %c0_3] : memref<32x128xf32, #tpu.memory_space<vmem>>, vector<32x128xf32>
    %c0_4 = arith.constant 0 : index
    %c0_5 = arith.constant 0 : index
    %6 = vector.load %arg3[%c0_4, %c0_5] : memref<32x128xbf16, #tpu.memory_space<vmem>>, vector<32x128xbf16>
    %cst = arith.constant dense<0.000000e+00> : vector<32x128xf32>
    %7 = tpu.matmul %4, %6, %cst {dimension_numbers = #tpu.dot_dimension_numbers<[1], [0], [0], [1], [0, 0, 1, 1], [], []>} : vector<32x32xbf16>, vector<32x128xbf16>, vector<32x128xf32> -> vector<32x128xf32>
    %8 = arith.addf %5, %7 : vector<32x128xf32>
    %c0_6 = arith.constant 0 : index
    %c0_7 = arith.constant 0 : index
    %9 = vector.load %arg7[%c0_6, %c0_7] : memref<32x128xf32, #tpu.memory_space<vmem>>, vector<32x128xf32>
    tpu.vector_store %arg7[%c0_6, %c0_7], %8 {strides = array<i32>} : memref<32x128xf32, #tpu.memory_space<vmem>>, vector<32x128xf32>,
    %c0_i32_8 = arith.constant 0 : i32
    %10 = arith.cmpi eq, %arg1, %c0_i32_8 : i32
    %11 = arith.extui %10 : i1 to i32
    %c0_i32_9 = arith.constant 0 : i32
    %12 = arith.cmpi ne, %11, %c0_i32_9 : i32
    scf.if %12 {
      %c0_10 = arith.constant 0 : index
      %c0_11 = arith.constant 0 : index
      %13 = vector.load %arg7[%c0_10, %c0_11] : memref<32x128xf32, #tpu.memory_space<vmem>>, vector<32x128xf32>
      %c0_12 = arith.constant 0 : index
      %c0_13 = arith.constant 0 : index
      %14 = vector.load %arg4[%c0_12, %c0_13] : memref<32x1xf32, #tpu.memory_space<vmem>>, vector<32x1xf32>
      %15 = vector.broadcast %14 : vector<32x1xf32> to vector<32x128xf32>
      %16 = arith.mulf %13, %15 : vector<32x128xf32>
      %c0_14 = arith.constant 0 : index
      %c0_15 = arith.constant 0 : index
      %17 = vector.load %arg5[%c0_14, %c0_15] : memref<1x128xf32, #tpu.memory_space<vmem>>, vector<1x128xf32>
      %18 = vector.broadcast %17 : vector<1x128xf32> to vector<32x128xf32>
      %19 = arith.addf %16, %18 : vector<32x128xf32>
      %c0_16 = arith.constant 0 : index
      %c0_17 = arith.constant 0 : index
      %20 = vector.load %arg6[%c0_16, %c0_17] : memref<32x128xf32, #tpu.memory_space<vmem>>, vector<32x128xf32>
      tpu.vector_store %arg6[%c0_16, %c0_17], %19 {strides = array<i32>} : memref<32x128xf32, #tpu.memory_space<vmem>>, vector<32x128xf32>,
    } else {
    }
    return
  }
  func.func @transform_0(%arg0: i32, %arg1: i32) -> (i32, i32) {
    %c0_i32 = arith.constant 0 : i32
    return %arg0, %arg1 : i32, i32
  }
  func.func @transform_1(%arg0: i32, %arg1: i32) -> (i32, i32) {
    %c0_i32 = arith.constant 0 : i32
    %c0_i32_0 = arith.constant 0 : i32
    return %arg1, %c0_i32 : i32, i32
  }
  func.func @transform_2(%arg0: i32, %arg1: i32) -> (i32, i32) {
    %c0_i32 = arith.constant 0 : i32
    %c0_i32_0 = arith.constant 0 : i32
    return %arg0, %c0_i32 : i32, i32
  }
  func.func @transform_3(%arg0: i32, %arg1: i32) -> (i32, i32) {
    %c0_i32 = arith.constant 0 : i32
    %c0_i32_0 = arith.constant 0 : i32
    %c0_i32_1 = arith.constant 0 : i32
    return %c0_i32, %c0_i32_0 : i32, i32
  }
  func.func @transform_4(%arg0: i32, %arg1: i32) -> (i32, i32) {
    %c0_i32 = arith.constant 0 : i32
    %c0_i32_0 = arith.constant 0 : i32
    return %arg0, %c0_i32 : i32, i32
  }
}

module attributes {stable_mosaic.version = 11 : i64} {
  func.func @gcn_pass1_kernel(%arg0: i32, %arg1: i32, %arg2: memref<32x32xi8, #tpu.memory_space<vmem>>, %arg3: memref<32x128xbf16, #tpu.memory_space<vmem>>, %arg4: memref<32x1xf32, #tpu.memory_space<vmem>>, %arg5: memref<128x128xbf16, #tpu.memory_space<vmem>>, %arg6: memref<1x128xf32, #tpu.memory_space<vmem>>, %arg7: memref<128x128xbf16, #tpu.memory_space<vmem>>, %arg8: memref<32x128xbf16, #tpu.memory_space<vmem>>, %arg9: memref<32x128xf32, #tpu.memory_space<vmem>>) attributes {dimension_semantics = [#tpu.dimension_semantics<parallel>, #tpu.dimension_semantics<arbitrary>], iteration_bounds = array<i64: 1, 1>, scalar_prefetch = 0 : i64, scratch_operands = 1 : i64, tpu.core_type = #tpu.core_type<tc>, window_params = [{transform_indices = @transform_0, window_bounds = array<i64: 32, 32>}, {transform_indices = @transform_1, window_bounds = array<i64: 32, 128>}, {transform_indices = @transform_2, window_bounds = array<i64: 32, 1>}, {pipeline_mode = #tpu.pipeline_mode<synchronous>, transform_indices = @transform_3, window_bounds = array<i64: 128, 128>}, {pipeline_mode = #tpu.pipeline_mode<synchronous>, transform_indices = @transform_4, window_bounds = array<i64: 1, 128>}, {pipeline_mode = #tpu.pipeline_mode<synchronous>, transform_indices = @transform_5, window_bounds = array<i64: 128, 128>}, {transform_indices = @transform_6, window_bounds = array<i64: 32, 128>}]} {
    %c0_i32 = arith.constant 0 : i32
    %0 = arith.cmpi eq, %arg1, %c0_i32 : i32
    %1 = arith.extui %0 : i1 to i32
    %c0_i32_0 = arith.constant 0 : i32
    %2 = arith.cmpi ne, %1, %c0_i32_0 : i32
    scf.if %2 {
      %cst_10 = arith.constant 0.000000e+00 : f32
      %13 = vector.broadcast %cst_10 : f32 to vector<32x128xf32>
      %c0_11 = arith.constant 0 : index
      %c0_12 = arith.constant 0 : index
      %14 = vector.load %arg9[%c0_11, %c0_12] : memref<32x128xf32, #tpu.memory_space<vmem>>, vector<32x128xf32>
      tpu.vector_store %arg9[%c0_11, %c0_12], %13 {strides = array<i32>} : memref<32x128xf32, #tpu.memory_space<vmem>>, vector<32x128xf32>,
    } else {
    }
    %c0 = arith.constant 0 : index
    %c0_1 = arith.constant 0 : index
    %3 = vector.load %arg2[%c0, %c0_1] : memref<32x32xi8, #tpu.memory_space<vmem>>, vector<32x32xi8>
    %4 = arith.sitofp %3 : vector<32x32xi8> to vector<32x32xbf16>
    %c0_2 = arith.constant 0 : index
    %c0_3 = arith.constant 0 : index
    %5 = vector.load %arg9[%c0_2, %c0_3] : memref<32x128xf32, #tpu.memory_space<vmem>>, vector<32x128xf32>
    %c0_4 = arith.constant 0 : index
    %c0_5 = arith.constant 0 : index
    %6 = vector.load %arg3[%c0_4, %c0_5] : memref<32x128xbf16, #tpu.memory_space<vmem>>, vector<32x128xbf16>
    %cst = arith.constant dense<0.000000e+00> : vector<32x128xf32>
    %7 = tpu.matmul %4, %6, %cst {dimension_numbers = #tpu.dot_dimension_numbers<[1], [0], [0], [1], [0, 0, 1, 1], [], []>} : vector<32x32xbf16>, vector<32x128xbf16>, vector<32x128xf32> -> vector<32x128xf32>
    %8 = arith.addf %5, %7 : vector<32x128xf32>
    %c0_6 = arith.constant 0 : index
    %c0_7 = arith.constant 0 : index
    %9 = vector.load %arg9[%c0_6, %c0_7] : memref<32x128xf32, #tpu.memory_space<vmem>>, vector<32x128xf32>
    tpu.vector_store %arg9[%c0_6, %c0_7], %8 {strides = array<i32>} : memref<32x128xf32, #tpu.memory_space<vmem>>, vector<32x128xf32>,
    %c0_i32_8 = arith.constant 0 : i32
    %10 = arith.cmpi eq, %arg1, %c0_i32_8 : i32
    %11 = arith.extui %10 : i1 to i32
    %c0_i32_9 = arith.constant 0 : i32
    %12 = arith.cmpi ne, %11, %c0_i32_9 : i32
    scf.if %12 {
      %c0_10 = arith.constant 0 : index
      %c0_11 = arith.constant 0 : index
      %13 = vector.load %arg4[%c0_10, %c0_11] : memref<32x1xf32, #tpu.memory_space<vmem>>, vector<32x1xf32>
      %c0_12 = arith.constant 0 : index
      %c0_13 = arith.constant 0 : index
      %14 = vector.load %arg9[%c0_12, %c0_13] : memref<32x128xf32, #tpu.memory_space<vmem>>, vector<32x128xf32>
      %15 = vector.broadcast %13 : vector<32x1xf32> to vector<32x128xf32>
      %16 = arith.mulf %14, %15 : vector<32x128xf32>
      %17 = arith.truncf %16 : vector<32x128xf32> to vector<32x128xbf16>
      %c0_14 = arith.constant 0 : index
      %c0_15 = arith.constant 0 : index
      %18 = vector.load %arg5[%c0_14, %c0_15] : memref<128x128xbf16, #tpu.memory_space<vmem>>, vector<128x128xbf16>
      %cst_16 = arith.constant dense<0.000000e+00> : vector<32x128xf32>
      %19 = tpu.matmul %17, %18, %cst_16 {dimension_numbers = #tpu.dot_dimension_numbers<[1], [0], [0], [1], [0, 0, 1, 1], [], []>} : vector<32x128xbf16>, vector<128x128xbf16>, vector<32x128xf32> -> vector<32x128xf32>
      %c0_17 = arith.constant 0 : index
      %c0_18 = arith.constant 0 : index
      %20 = vector.load %arg6[%c0_17, %c0_18] : memref<1x128xf32, #tpu.memory_space<vmem>>, vector<1x128xf32>
      %21 = vector.broadcast %20 : vector<1x128xf32> to vector<32x128xf32>
      %22 = arith.addf %19, %21 : vector<32x128xf32>
      %cst_19 = arith.constant 0.000000e+00 : f32
      %23 = vector.broadcast %cst_19 : f32 to vector<32x128xf32>
      %24 = arith.maximumf %22, %23 : vector<32x128xf32>
      %25 = arith.truncf %24 : vector<32x128xf32> to vector<32x128xbf16>
      %c0_20 = arith.constant 0 : index
      %c0_21 = arith.constant 0 : index
      %26 = vector.load %arg7[%c0_20, %c0_21] : memref<128x128xbf16, #tpu.memory_space<vmem>>, vector<128x128xbf16>
      %cst_22 = arith.constant dense<0.000000e+00> : vector<32x128xf32>
      %27 = tpu.matmul %25, %26, %cst_22 {dimension_numbers = #tpu.dot_dimension_numbers<[1], [0], [0], [1], [0, 0, 1, 1], [], []>} : vector<32x128xbf16>, vector<128x128xbf16>, vector<32x128xf32> -> vector<32x128xf32>
      %28 = vector.broadcast %13 : vector<32x1xf32> to vector<32x128xf32>
      %29 = arith.mulf %27, %28 : vector<32x128xf32>
      %30 = arith.truncf %29 : vector<32x128xf32> to vector<32x128xbf16>
      %c0_23 = arith.constant 0 : index
      %c0_24 = arith.constant 0 : index
      %31 = vector.load %arg8[%c0_23, %c0_24] : memref<32x128xbf16, #tpu.memory_space<vmem>>, vector<32x128xbf16>
      tpu.vector_store %arg8[%c0_23, %c0_24], %30 {strides = array<i32>} : memref<32x128xbf16, #tpu.memory_space<vmem>>, vector<32x128xbf16>,
    } else {
    }
    return
  }
  func.func @transform_0(%arg0: i32, %arg1: i32) -> (i32, i32) {
    %c0_i32 = arith.constant 0 : i32
    return %arg0, %arg1 : i32, i32
  }
  func.func @transform_1(%arg0: i32, %arg1: i32) -> (i32, i32) {
    %c0_i32 = arith.constant 0 : i32
    %c0_i32_0 = arith.constant 0 : i32
    return %arg1, %c0_i32 : i32, i32
  }
  func.func @transform_2(%arg0: i32, %arg1: i32) -> (i32, i32) {
    %c0_i32 = arith.constant 0 : i32
    %c0_i32_0 = arith.constant 0 : i32
    return %arg0, %c0_i32 : i32, i32
  }
  func.func @transform_3(%arg0: i32, %arg1: i32) -> (i32, i32) {
    %c0_i32 = arith.constant 0 : i32
    %c0_i32_0 = arith.constant 0 : i32
    %c0_i32_1 = arith.constant 0 : i32
    return %c0_i32, %c0_i32_0 : i32, i32
  }
  func.func @transform_4(%arg0: i32, %arg1: i32) -> (i32, i32) {
    %c0_i32 = arith.constant 0 : i32
    %c0_i32_0 = arith.constant 0 : i32
    %c0_i32_1 = arith.constant 0 : i32
    return %c0_i32, %c0_i32_0 : i32, i32
  }
  func.func @transform_5(%arg0: i32, %arg1: i32) -> (i32, i32) {
    %c0_i32 = arith.constant 0 : i32
    %c0_i32_0 = arith.constant 0 : i32
    %c0_i32_1 = arith.constant 0 : i32
    return %c0_i32, %c0_i32_0 : i32, i32
  }
  func.func @transform_6(%arg0: i32, %arg1: i32) -> (i32, i32) {
    %c0_i32 = arith.constant 0 : i32
    %c0_i32_0 = arith.constant 0 : i32
    return %arg0, %c0_i32 : i32, i32
  }
}

</mosaic_0001>

<bundles_post_ra>
// kernel: gnn_encoder.3
= control target key start
LH: loop header
LB: loop body
LE: loop exit
PB: predicated region body
PF: predicated region fallthrough
CT: control target
= control target key end

     0   :  { %v246_v5 = vmov 0   ;;  %vm65_vm0 = vcmask 261120   ;;  %s320_s0 = inlined_call_operand.vmem [shape: s8[32,32], index: 0, kind: input, shape index: {}]   ;;  %s321_s1 = inlined_call_operand.vmem [shape: bf16[32,128], index: 1, kind: input, shape index: {}]   ;;  %s322_s2 = inlined_call_operand.vmem [shape: f32[32,1], index: 2, kind: input, shape index: {}]   ;;  %s323_s3 = inlined_call_operand.vmem [shape: f32[1,128], index: 3, kind: input, shape index: {}]   ;;  %s324_s4 = inlined_call_operand.hbm [shape: f32[32,128], index: 4, kind: output, shape index: {}]  }
   0x1   :  { %v220_v0 = vld [vmem:[%s321_s1] sm:$0xff]   ;;  %v221_v1 = vld [vmem:[%s321_s1 + $0x8] sm:$0xff]   ;;  %219 = vset.pattern.permute.xlu1 %v246_v5  ;;  %218 = vset.pattern.permute.xlu0 %v246_v5  ;;  %v138_v10 = vld [vmem:[%s322_s2 + $0x10] sm:$0xff] }
   0x2   :  { %206 = vmatprep.subr.bf16.mxu0 %v220_v0  ;;  %v27_v2 = vld [vmem:[%s320_s0] sm:$0x3]  ;;  %v28_v3 = vld [vmem:[%s320_s0 + $0x2] sm:$0x3]  ;;  %v29_v4 = vld [vmem:[%s320_s0 + $0x4] sm:$0x3]  ;;  %152 = vperm.xlu1 %219, %v138_v10  }
   0x3   :  { %207 = vmatpush3.bf16.msra.mxu0 %v220_v0  ;;  %v31_v6 = vunpack.c.l.s8.bf16 %v27_v2  ;;  %v32_v7 = vunpack.c.l.s8.bf16 %v28_v3  ;;  %v30_v8 = vld [vmem:[%s320_s0 + $0x6] sm:$0x3]  ;;  %v33_v9 = vunpack.c.l.s8.bf16 %v29_v4 }
   0x4   :  { %v136_v11 = vld [vmem:[%s322_s2] sm:$0xff]  ;;  %208 = vmatprep.subr.bf16.mxu0 %v221_v1  ;;  %v34_v12 = vunpack.c.l.s8.bf16 %v30_v8 }
   0x5   :  { %9 = vsyncpa [#allocation4], 0  ;;  %v195_v13 = vcombine.low %v31_v6, %v32_v7  ;;  %142 = vperm.xlu0 %218, %v136_v11   ;;  %v139_v14 = vld [vmem:[%s322_s2 + $0x18] sm:$0xff]  ;;  %v137_v16 = vld [vmem:[%s322_s2 + $0x8] sm:$0xff]  ;;  %s247_s9 = smov [#allocation3]  }
   0x6   :  { %v196_v15 = vcombine.low %v33_v9, %v34_v12  ;;  %157 = vperm.xlu1 %219, %v139_v14   ;;  %v201_v20 = vld [vmem:[%s323_s3] ss:$0 sm:$0xff]  ;;  %s184_s10 = sshll.u32 %s247_s9, 4  ;;  %s185_s10 = int_to_ptr.vmem [resolvable:$true] %s184_s10 }
   0x7   :  { %209 = vmatpush3.bf16.msra.mxu0 %v221_v1  ;;  %210 = vmatprep.mubr.msk.bf16.mxu0 %vm65_vm0, %v195_v13  ;;  %s222_s2 = scalar_lea.vmem %s185_s10, 512  ;;  %p227_p1 = scmp.lt.s32.totalorder %s185_s10, %s185_s10 }
   0x8   :  { %p223_p0 = scmp.ne.s32.totalorder %s185_s10, %s222_s2  ;;  %p228_p2 = scmp.lt.s32.totalorder %s222_s2, %s222_s2 }
   0x9   :  { %147 = vperm.xlu0 %218, %v137_v16  }
   0xa   :  { %211 = vmatmul.mubr.msk.bf16.vlgmr.msra.gmra.mrb[0].mxu0 %vm65_vm0, %v196_v15  ;;  %p229_p3 = por %p228_p2, %p227_p1 }
   0xc   :  { %p230_p4 = pnand %p229_p3, %p223_p0 }
  0x81   :  { %v153_v17 = vpop.permute.xlu1 %152 }
  0x84   :  { %v143_v18 = vpop.permute.xlu0 %142 }
  0x85   :  { %v158_v23 = vpop.permute.xlu1 %157 }
  0x88   :  { %v148_v26 = vpop.permute.xlu0 %147 }
  0xdd   :  { %v212_v19 = vpop.f32.mrb[0].mxu0 }
  0xde   :  { %v162_v21 = vmul.f32 %v212_v19, %v153_v17  ;;  %v106_v22 = vpop.f32.mrb[1].mxu0 }
  0xdf   :  { %v160_v24 = vmul.f32 %v143_v18, %v106_v22  ;;  %v213_v25 = vpop.f32.mrb[2].mxu0 }
  0xe0   :  { %v173_v27 = vadd.f32 %v201_v20, %v162_v21  ;;  %v163_v28 = vmul.f32 %v213_v25, %v158_v23  ;;  %v109_v29 = vpop.f32.mrb[3].mxu0 }
  0xe1   :  { %v171_v30 = vadd.f32 %v201_v20, %v160_v24  ;;  %v161_v31 = vmul.f32 %v148_v26, %v109_v29 }
  0xe2   :  { %177 = vst [vmem:[#allocation3 + $0x10] sm:$0xff] %v173_v27  ;;  %v174_v32 = vadd.f32 %v201_v20, %v163_v28 }
  0xe3   :  { %175 = vst [vmem:[#allocation3] sm:$0xff] %v171_v30  ;;  %v172_v33 = vadd.f32 %v201_v20, %v161_v31 }
  0xe4   :  { %178 = vst [vmem:[#allocation3 + $0x18] sm:$0xff] %v174_v32 }
  0xe5   :  { %176 = vst [vmem:[#allocation3 + $0x8] sm:$0xff] %v172_v33 }
  0xe6   :  { %233 = shalt.err (!%p230_p4)
}
  0xe7   :  { %s234_s12 = scalar_lea.hbm %s324_s4, 512 }
  0xe8   :  { %p235_p5 = scmp.ne.s32.totalorder %s324_s4, %s234_s12  ;;  %p238_p6 = scmp.lt.u32.totalorder %s234_s12, %s324_s4 }
  0xea   :  { %p240_p7 = pnand %p238_p6, %p235_p5 }
  0xec   :  { %243 = shalt.err (!%p240_p7)
}
  0xed   :  { %s248_s17 = smov 128   ;;  %s249_s18 = smov 8  }
  0xee   :  { %190 = dma.vmem_to_hbm [thread:$0]  %s185_s10, 512, %s324_s4, [#allocation4], %s248_s17, %s248_s17, %s249_s18  }
  0xef   :  { %244 = dma.done.wait [#allocation4], 512  }
  0xf0   :  { %245 = vsyncadd [#allocation4], 4294966784 }
  0xf1   :  { %194 = vsyncpa [#allocation4], 1 }

// kernel: gnn_encoder.2
= control target key start
LH: loop header
LB: loop body
LE: loop exit
PB: predicated region body
PF: predicated region fallthrough
CT: control target
= control target key end

     0   :  { %v573_v1 = vmov 0   ;;  %vm70_vm0 = vcmask 261120   ;;  %s698_s1 = inlined_call_operand.vmem [shape: bf16[32,128], index: 1, kind: input, shape index: {}]   ;;  %s699_s0 = inlined_call_operand.vmem [shape: s8[32,32], index: 0, kind: input, shape index: {}]   ;;  %s700_s2 = inlined_call_operand.vmem [shape: f32[32,1], index: 2, kind: input, shape index: {}]   ;;  %s701_s3 = inlined_call_operand.vmem [shape: bf16[128,128], index: 3, kind: input, shape index: {}]   ;;  %s702_s5 = inlined_call_operand.vmem [shape: bf16[128,128], index: 5, kind: input, shape index: {}]   ;;  %s703_s4 = inlined_call_operand.vmem [shape: f32[1,128], index: 4, kind: input, shape index: {}]   ;;  %s704_s6 = inlined_call_operand.vmem [shape: bf16[32,128], index: 6, kind: output, shape index: {}]  }
   0x1   :  { %v555_v0 = vld [vmem:[%s698_s1] sm:$0xff]   ;;  %553 = vset.pattern.permute.xlu0 %v573_v1  ;;  %554 = vset.pattern.permute.xlu1 %v573_v1  ;;  %v556_v2 = vld [vmem:[%s698_s1 + $0x8] sm:$0xff]   ;;  %v139_v11 = vld [vmem:[%s700_s2 + $0x10] sm:$0xff] }
   0x2   :  { %504 = vmatprep.subr.bf16.mxu0 %v555_v0  ;;  %v32_v3 = vld [vmem:[%s699_s0] sm:$0x3]  ;;  %v33_v4 = vld [vmem:[%s699_s0 + $0x2] sm:$0x3]  ;;  %v34_v5 = vld [vmem:[%s699_s0 + $0x4] sm:$0x3]  ;;  %157 = vperm.xlu1 %554, %v139_v11  }
   0x3   :  { %505 = vmatpush3.bf16.msra.mxu0 %v555_v0  ;;  %v36_v6 = vunpack.c.l.s8.bf16 %v32_v3  ;;  %v37_v7 = vunpack.c.l.s8.bf16 %v33_v4  ;;  %v35_v8 = vld [vmem:[%s699_s0 + $0x6] sm:$0x3]  ;;  %v38_v9 = vunpack.c.l.s8.bf16 %v34_v5  ;;  %v138_v13 = vld [vmem:[%s700_s2 + $0x8] sm:$0xff]  ;;  %v140_v14 = vld [vmem:[%s700_s2 + $0x18] sm:$0xff] }
   0x4   :  { %v137_v10 = vld [vmem:[%s700_s2] sm:$0xff]  ;;  %506 = vmatprep.subr.bf16.mxu0 %v556_v2  ;;  %v39_v12 = vunpack.c.l.s8.bf16 %v35_v8  ;;  %v558_v18 = vld [vmem:[%s701_s3 + $0x8] sm:$0xff]   ;;  %v559_v19 = vld [vmem:[%s701_s3 + $0x10] sm:$0xff]  }
   0x5   :  { %147 = vperm.xlu0 %553, %v137_v10   ;;  %v438_v15 = vcombine.low %v36_v6, %v37_v7  ;;  %v557_v16 = vld [vmem:[%s701_s3] sm:$0xff]   ;;  %v560_v20 = vld [vmem:[%s701_s3 + $0x18] sm:$0xff]   ;;  %v562_v22 = vld [vmem:[%s701_s3 + $0x28] sm:$0xff]  }
   0x6   :  { %v439_v17 = vcombine.low %v38_v9, %v39_v12  ;;  %512 = vmatprep.subr.bf16.mxu1 %v557_v16  ;;  %162 = vperm.xlu1 %554, %v140_v14   ;;  %v561_v21 = vld [vmem:[%s701_s3 + $0x20] sm:$0xff]   ;;  %v563_v23 = vld [vmem:[%s701_s3 + $0x30] sm:$0xff]   ;;  %v564_v24 = vld [vmem:[%s701_s3 + $0x38] sm:$0xff]  }
   0x7   :  { %507 = vmatpush3.bf16.msra.mxu0 %v556_v2  ;;  %508 = vmatprep.mubr.msk.bf16.mxu0 %vm70_vm0, %v438_v15  ;;  %v565_v25 = vld [vmem:[%s702_s5] sm:$0xff]   ;;  %v566_v26 = vld [vmem:[%s702_s5 + $0x8] sm:$0xff]   ;;  %v567_v27 = vld [vmem:[%s702_s5 + $0x10] sm:$0xff]  }
   0x8   :  { %513 = vmatpush3.bf16.msra.mxu1 %v557_v16  ;;  %532 = vmatprep.subr.bf16.mxu0 %v565_v25  ;;  %v568_v28 = vld [vmem:[%s702_s5 + $0x18] sm:$0xff]   ;;  %v569_v29 = vld [vmem:[%s702_s5 + $0x20] sm:$0xff]   ;;  %v570_v30 = vld [vmem:[%s702_s5 + $0x28] sm:$0xff]  }
   0x9   :  { %152 = vperm.xlu0 %553, %v138_v13   ;;  %514 = vmatprep.subr.bf16.mxu1 %v558_v18  ;;  %v571_v45 = vld [vmem:[%s702_s5 + $0x30] sm:$0xff]   ;;  %v572_v46 = vld [vmem:[%s702_s5 + $0x38] sm:$0xff]   ;;  %v444_v47 = vld [vmem:[%s703_s4] ss:$0 sm:$0xff] }
   0xa   :  { %509 = vmatmul.mubr.msk.bf16.vlgmr.msra.gmra.mrb[0].mxu0 %vm70_vm0, %v439_v17 }
   0xb   :  { %533 = vmatpush3.bf16.msra.mxu0 %v565_v25 }
   0xc   :  { %515 = vmatpush3.bf16.msra.mxu1 %v558_v18  ;;  %534 = vmatprep.subr.bf16.mxu0 %v566_v26 }
   0xd   :  { %516 = vmatprep.subr.bf16.mxu1 %v559_v19 }
   0xf   :  { %535 = vmatpush3.bf16.msra.mxu0 %v566_v26 }
  0x10   :  { %517 = vmatpush3.bf16.msra.mxu1 %v559_v19  ;;  %536 = vmatprep.subr.bf16.mxu0 %v567_v27 }
  0x11   :  { %518 = vmatprep.subr.bf16.mxu1 %v560_v20 }
  0x13   :  { %537 = vmatpush3.bf16.msra.mxu0 %v567_v27 }
  0x14   :  { %519 = vmatpush3.bf16.msra.mxu1 %v560_v20  ;;  %538 = vmatprep.subr.bf16.mxu0 %v568_v28 }
  0x15   :  { %520 = vmatprep.subr.bf16.mxu1 %v561_v21 }
  0x17   :  { %539 = vmatpush3.bf16.msra.mxu0 %v568_v28 }
  0x18   :  { %521 = vmatpush3.bf16.msra.mxu1 %v561_v21  ;;  %540 = vmatprep.subr.bf16.mxu0 %v569_v29 }
  0x19   :  { %522 = vmatprep.subr.bf16.mxu1 %v562_v22 }
  0x1b   :  { %541 = vmatpush3.bf16.msra.mxu0 %v569_v29 }
  0x1c   :  { %523 = vmatpush3.bf16.msra.mxu1 %v562_v22  ;;  %542 = vmatprep.subr.bf16.mxu0 %v570_v30 }
  0x1d   :  { %524 = vmatprep.subr.bf16.mxu1 %v563_v23 }
  0x1f   :  { %543 = vmatpush3.bf16.msra.mxu0 %v570_v30 }
  0x20   :  { %525 = vmatpush3.bf16.msra.mxu1 %v563_v23  ;;  %544 = vmatprep.subr.bf16.mxu0 %v571_v45 }
  0x21   :  { %526 = vmatprep.subr.bf16.mxu1 %v564_v24 }
  0x23   :  { %545 = vmatpush3.bf16.msra.mxu0 %v571_v45 }
  0x24   :  { %527 = vmatpush3.bf16.msra.mxu1 %v564_v24  ;;  %546 = vmatprep.subr.bf16.mxu0 %v572_v46 }
  0x27   :  { %547 = vmatpush3.bf16.msra.mxu0 %v572_v46 }
  0x81   :  { %v158_v31 = vpop.permute.xlu1 %157 }
  0x84   :  { %v148_v32 = vpop.permute.xlu0 %147 }
  0x85   :  { %v163_v35 = vpop.permute.xlu1 %162 }
  0x88   :  { %v153_v37 = vpop.permute.xlu0 %152 }
  0xdd   :  { %v510_v33 = vpop.f32.mrb[0].mxu0 }
  0xde   :  { %v111_v34 = vpop.f32.mrb[1].mxu0  ;;  %v167_v38 = vmul.f32 %v510_v33, %v158_v31 }
  0xdf   :  { %v511_v36 = vpop.f32.mrb[2].mxu0  ;;  %v165_v41 = vmul.f32 %v148_v32, %v111_v34 }
  0xe0   :  { %v168_v39 = vmul.f32 %v511_v36, %v163_v35  ;;  %v114_v40 = vpop.f32.mrb[3].mxu0 }
  0xe1   :  { %v166_v42 = vmul.f32 %v153_v37, %v114_v40 }
  0xe2   :  { %v170_v43 = vpack.c.bf16 %v168_v39, %v167_v38 }
  0xe3   :  { %v169_v44 = vpack.c.bf16 %v166_v42, %v165_v41 }
  0xe5   :  { %528 = vmatprep.mubr.bf16.mxu1 %v169_v44 }
  0xe6   :  { %529 = vmatmul.mubr.bf16.vlgmr.msra.gmra.mrb[0].mxu1 %v170_v43 }
 0x1b9   :  { %v530_v48 = vpop.f32.mrb[0].mxu1 }
 0x1ba   :  { %v285_v49 = vadd.f32 %v530_v48, %v444_v47  ;;  %v276_v50 = vpop.f32.mrb[1].mxu1 }
 0x1bb   :  { %v277_v51 = vadd.f32 %v444_v47, %v276_v50  ;;  %v531_v52 = vpop.f32.mrb[2].mxu1 }
 0x1bc   :  { %v288_v53 = vadd.f32 %v531_v52, %v444_v47  ;;  %v279_v54 = vpop.f32.mrb[3].mxu1  ;;  %v293_v56 = vmax.f32 %v285_v49, 0.0 }
 0x1bd   :  { %v280_v55 = vadd.f32 %v444_v47, %v279_v54  ;;  %v291_v58 = vmax.f32 %v277_v51, 0.0 }
 0x1be   :  { %v294_v57 = vmax.f32 %v288_v53, 0.0 }
 0x1bf   :  { %v292_v59 = vmax.f32 %v280_v55, 0.0 }
 0x1c0   :  { %v296_v60 = vpack.c.bf16 %v294_v57, %v293_v56 }
 0x1c1   :  { %v295_v61 = vpack.c.bf16 %v292_v59, %v291_v58 }
 0x1c3   :  { %548 = vmatprep.mubr.bf16.mxu0 %v295_v61 }
 0x1c4   :  { %549 = vmatmul.mubr.bf16.vlgmr.msra.gmra.mrb[4].mxu0 %v296_v60 }
 0x297   :  { %v550_v62 = vpop.f32.mrb[4].mxu0 }
 0x298   :  { %v395_v63 = vpop.f32.mrb[5].mxu0  ;;  %v412_v1 = vmul.f32 %v550_v62, %v158_v31 }
 0x299   :  { %v551_v0 = vpop.f32.mrb[6].mxu0  ;;  %v410_v4 = vmul.f32 %v395_v63, %v148_v32 }
 0x29a   :  { %v413_v2 = vmul.f32 %v551_v0, %v163_v35  ;;  %v398_v3 = vpop.f32.mrb[7].mxu0 }
 0x29b   :  { %v411_v5 = vmul.f32 %v398_v3, %v153_v37 }
 0x29c   :  { %v477_v6 = vpack.c.bf16 %v413_v2, %v412_v1 }
 0x29d   :  { %v472_v7 = vpack.c.bf16 %v411_v5, %v410_v4 }
 0x29e   :  { %479 = vst [vmem:[%s704_s6 + $0x8] sm:$0xff] %v477_v6  }
 0x29f   :  { %473 = vst [vmem:[%s704_s6] sm:$0xff] %v472_v7  }

</bundles_post_ra>
